<compile_context>
chip_gen: v5e
topology: v5e:2x2
jax: 0.10.0
libtpu: 0.0.40
codegen_flags: <defaults>
</compile_context>

<pallas_src>
import jax
import jax.numpy as jnp
from jax.experimental import pallas as pl
from jax.experimental.pallas import tpu as pltpu


def _round_up(x, m):
    return ((x + m - 1) // m) * m


def _embed_block_kernel(ids_ref, table_ref, out_ref):
    """One grid step: embed a block of T tokens.

    ids_ref   : (T, 1) int32  -- token ids for this block (pre-clamped to [0, V)).
    table_ref : (V, D) f32    -- full embedding table, VMEM-resident across the grid.
    out_ref   : (T, D) f32    -- embedded vectors for this block.
    """
    ids = ids_ref[...]                                   # (T, 1) int32
    T = ids.shape[0]
    V = table_ref.shape[0]
    # One-hot selection matrix built on the VPU; the gather becomes an MXU matmul.
    onehot = (jax.lax.broadcasted_iota(jnp.int32, (T, V), 1) == ids)
    onehot = onehot.astype(table_ref.dtype)
    out_ref[...] = jnp.dot(
        onehot,
        table_ref[...],
        preferred_element_type=jnp.float32,
        precision=jax.lax.Precision.HIGHEST,
    ).astype(out_ref.dtype)


def embedding_lookup(indices, table, *, block_tokens=128):
    """nn.Embedding forward: indices (B, S) int -> (B, S, D) table.dtype."""
    B, S = indices.shape
    V, D = table.shape
    N = B * S

    # VMEM-resident-table fast path; keep the table well inside the scoped VMEM
    # limit on every generation (v7x has only 64 MiB physical VMEM).
    table_bytes = V * D * jnp.dtype(table.dtype).itemsize
    assert table_bytes <= 16 * 1024 * 1024, "table too large for VMEM-resident path"
    # TODO(synk): add an HBM double-buffered DMA-gather path for large vocabularies.

    # Clamp out-of-range ids (torch nn.Embedding would raise; see perf review).
    flat = jnp.clip(indices.reshape(N).astype(jnp.int32), 0, V - 1)

    # T tokens per grid step; pad N up so the grid tiles evenly (pad id 0 is valid,
    # padded rows are sliced off below).
    T = min(block_tokens, _round_up(N, 8))
    N_pad = _round_up(N, T)
    flat = jnp.pad(flat, (0, N_pad - N))
    ids2d = flat.reshape(N_pad, 1)

    out_flat = pl.pallas_call(
        _embed_block_kernel,
        out_shape=jax.ShapeDtypeStruct((N_pad, D), table.dtype),
        grid_spec=pltpu.PrefetchScalarGridSpec(
            num_scalar_prefetch=0,
            grid=(N_pad // T,),
            in_specs=[
                # token-id block for this grid step
                pl.BlockSpec((T, 1), lambda i: (i, 0)),
                # full embedding table; constant block index -> stays resident in VMEM
                pl.BlockSpec((V, D), lambda i: (0, 0)),
            ],
            out_specs=pl.BlockSpec((T, D), lambda i: (i, 0)),
        ),
        compiler_params=pltpu.CompilerParams(
            dimension_semantics=("parallel",),   # independent token blocks (v7x 2x TC)
        ),
    )(ids2d, table)

    return out_flat[:N].reshape(B, S, D)


def make_embedding_table(key, vocab_size, embedding_dim, dtype=jnp.float32):
    """Deterministic Xavier-normal init (matches nn.init.xavier_normal_)."""
    std = (2.0 / (vocab_size + embedding_dim)) ** 0.5
    return std * jax.random.normal(key, (vocab_size, embedding_dim), dtype=dtype)


if __name__ == "__main__":
    vocab_size = 64
    embedding_dim = 32
    batch = 2
    seq = 8

    key = jax.random.PRNGKey(0)
    k_emb, k_ids = jax.random.split(key)

    table = make_embedding_table(k_emb, vocab_size, embedding_dim)
    sentence = jax.random.randint(k_ids, (batch, seq), 0, vocab_size, dtype=jnp.int32)

    out = embedding_lookup(sentence, table)
    out = jax.block_until_ready(out)

    # Reference check (plain JAX gather) to make sure semantics match nn.Embedding.
    ref = table[sentence]
    assert out.shape == (batch, seq, embedding_dim)
    assert out.dtype == table.dtype
    assert jnp.allclose(out, ref, rtol=1e-3, atol=1e-5), "Pallas embedding lookup mismatch"

    print("KERNEL_OK")
</pallas_src>

<mosaic_0001>
module attributes {stable_mosaic.version = 11 : i64} {
  func.func @_embed_block_kernel(%arg0: i32, %arg1: memref<16x1xi32, #tpu.memory_space<vmem>>, %arg2: memref<64x32xf32, #tpu.memory_space<vmem>>, %arg3: memref<16x32xf32, #tpu.memory_space<vmem>>) attributes {dimension_semantics = [#tpu.dimension_semantics<parallel>], iteration_bounds = array<i64: 1>, scalar_prefetch = 0 : i64, scratch_operands = 0 : i64, tpu.core_type = #tpu.core_type<tc>, window_params = [{transform_indices = @transform_0, window_bounds = array<i64: 16, 1>}, {pipeline_mode = #tpu.pipeline_mode<synchronous>, transform_indices = @transform_1, window_bounds = array<i64: 64, 32>}, {transform_indices = @transform_2, window_bounds = array<i64: 16, 32>}]} {
    %c0 = arith.constant 0 : index
    %c0_0 = arith.constant 0 : index
    %0 = vector.load %arg1[%c0, %c0_0] : memref<16x1xi32, #tpu.memory_space<vmem>>, vector<16x1xi32>
    %1 = tpu.iota {dimensions = array<i32: 1>} : vector<16x64xi32>
    %2 = vector.broadcast %0 : vector<16x1xi32> to vector<16x64xi32>
    %3 = arith.cmpi eq, %1, %2 : vector<16x64xi32>
    %4 = arith.extui %3 : vector<16x64xi1> to vector<16x64xi32>
    %5 = arith.sitofp %4 : vector<16x64xi32> to vector<16x64xf32>
    %c0_1 = arith.constant 0 : index
    %c0_2 = arith.constant 0 : index
    %6 = vector.load %arg2[%c0_1, %c0_2] : memref<64x32xf32, #tpu.memory_space<vmem>>, vector<64x32xf32>
    %cst = arith.constant dense<0.000000e+00> : vector<16x32xf32>
    %7 = tpu.matmul %5, %6, %cst {dimension_numbers = #tpu.dot_dimension_numbers<[1], [0], [0], [1], [0, 0, 1, 1], [], []>, precision = #tpu.contract_precision<fp32>} : vector<16x64xf32>, vector<64x32xf32>, vector<16x32xf32> -> vector<16x32xf32>
    %c0_3 = arith.constant 0 : index
    %c0_4 = arith.constant 0 : index
    %8 = vector.load %arg3[%c0_3, %c0_4] : memref<16x32xf32, #tpu.memory_space<vmem>>, vector<16x32xf32>
    tpu.vector_store %arg3[%c0_3, %c0_4], %7 {strides = array<i32>} : memref<16x32xf32, #tpu.memory_space<vmem>>, vector<16x32xf32>,
    return
  }
  func.func @transform_0(%arg0: i32) -> (i32, i32) {
    %c0_i32 = arith.constant 0 : i32
    %c0_i32_0 = arith.constant 0 : i32
    return %arg0, %c0_i32 : i32, i32
  }
  func.func @transform_1(%arg0: i32) -> (i32, i32) {
    %c0_i32 = arith.constant 0 : i32
    %c0_i32_0 = arith.constant 0 : i32
    %c0_i32_1 = arith.constant 0 : i32
    return %c0_i32, %c0_i32_0 : i32, i32
  }
  func.func @transform_2(%arg0: i32) -> (i32, i32) {
    %c0_i32 = arith.constant 0 : i32
    %c0_i32_0 = arith.constant 0 : i32
    return %arg0, %c0_i32 : i32, i32
  }
}

</mosaic_0001>

<bundles_post_ra>
// kernel: tpu_custom_call.1
= control target key start
LH: loop header
LB: loop body
LE: loop exit
PB: predicated region body
PF: predicated region fallthrough
CT: control target
= control target key end

     0   :  { %v388_v2 = vmov 0   ;;  %s508_s0 = inlined_call_operand.vmem [shape: s32[16,1], index: 0, kind: input, shape index: {}]   ;;  %s509_s1 = inlined_call_operand.vmem [shape: f32[64,32], index: 1, kind: input, shape index: {}]   ;;  %s510_s2 = inlined_call_operand.hbm [shape: f32[16,32], index: 2, kind: output, shape index: {}]  }
   0x1   :  { %v12_v0 = vld [vmem:[%s508_s0] sm:$0xff]  ;;  %v35_v1 = vld [vmem:[%s509_s1 + $0x38] sm:$0xff]  ;;  %361 = vset.pattern.permute.xlu0 %v388_v2  ;;  %v34_v4 = vld [vmem:[%s509_s1 + $0x30] sm:$0xff] }
   0x2   :  { %v414_v3 = vand.u32 4294901760, %v35_v1  ;;  %v33_v5 = vld [vmem:[%s509_s1 + $0x28] sm:$0xff]  ;;  %v32_v6 = vld [vmem:[%s509_s1 + $0x20] sm:$0xff]  ;;  %17 = vperm.xlu0 %361, %v12_v0   ;;  %v425_v7 = vand.u32 4294901760, %v34_v4  ;;  %v31_v10 = vld [vmem:[%s509_s1 + $0x18] sm:$0xff] }
   0x3   :  { %v427_v8 = vand.u32 4294901760, %v33_v5  ;;  %v429_v9 = vand.u32 4294901760, %v32_v6  ;;  %v30_v11 = vld [vmem:[%s509_s1 + $0x10] sm:$0xff]  ;;  %v29_v12 = vld [vmem:[%s509_s1 + $0x8] sm:$0xff]  ;;  %v442_v14 = vand.u32 4294901760, %v31_v10 }
   0x4   :  { %v93_v13 = vsub.f32 %v35_v1, %v414_v3  ;;  %201 = vmatpush.msra.mxu3 %v414_v3  ;;  %52 = vmatpush.msra.mxu0 %v414_v3  ;;  %v445_v15 = vand.u32 4294901760, %v30_v11  ;;  %v447_v16 = vand.u32 4294901760, %v29_v12 }
   0x5   :  { %7 = vsyncpa [#allocation3], 0  ;;  %v99_v17 = vsub.f32 %v34_v4, %v425_v7  ;;  %v105_v18 = vsub.f32 %v33_v5, %v427_v8  ;;  %v111_v19 = vsub.f32 %v32_v6, %v429_v9  ;;  %v117_v21 = vsub.f32 %v31_v10, %v442_v14  ;;  %v13_v26 = vld [vmem:[%s508_s0 + $0x8] sm:$0xff]  ;;  %v28_v45 = vld [vmem:[%s509_s1] sm:$0xff]  ;;  %s390_s1 = smov [#allocation2]   ;;  %s320_s3 = sshll.u32 %s510_s2, 4  ;;  %s321_s3 = int_to_ptr.hbm [resolvable:$true] %s320_s3 }
   0x6   :  { %v94_v20 = vand.u32 4294901760, %v93_v13  ;;  %159 = vmatpush.msra.mxu2 %v93_v13  ;;  %203 = vmatpush.msra.mxu3 %v425_v7  ;;  %v123_v22 = vsub.f32 %v30_v11, %v445_v15  ;;  %v129_v29 = vsub.f32 %v29_v12, %v447_v16  ;;  %v65_v46 = vand.u32 4294901760, %v28_v45  ;;  %s318_s28 = sshll.u32 %s390_s1, 4  ;;  %s391_s4 = smov 128   ;;  %s319_s28 = int_to_ptr.vmem [resolvable:$true] %s318_s28 }
   0x7   :  { %v100_v23 = vand.u32 4294901760, %v99_v17  ;;  %v106_v24 = vand.u32 4294901760, %v105_v18  ;;  %v455_v25 = vand.u32 4294901760, %v111_v19  ;;  %54 = vmatpush.msra.mxu0 %v425_v7  ;;  %v461_v28 = vand.u32 4294901760, %v117_v21  ;;  %s392_s5 = smov 8  }
   0x8   :  { %v95_v27 = vsub.f32 %v93_v13, %v94_v20  ;;  %162 = vmatpush.msra.mxu2 %v99_v17  ;;  %205 = vmatpush.msra.mxu3 %v427_v8  ;;  %v124_v34 = vand.u32 4294901760, %v123_v22  ;;  %v130_v38 = vand.u32 4294901760, %v129_v29  ;;  %v135_v47 = vsub.f32 %v28_v45, %v65_v46 }
   0x9   :  { %v101_v30 = vsub.f32 %v99_v17, %v100_v23  ;;  %v107_v31 = vsub.f32 %v105_v18, %v106_v24  ;;  %56 = vmatpush.msra.mxu0 %v427_v8  ;;  %v113_v33 = vsub.f32 %v111_v19, %v455_v25  ;;  %v119_v37 = vsub.f32 %v117_v21, %v461_v28 }
   0xa   :  { %v96_v32 = vand.u32 4294901760, %v95_v27  ;;  %165 = vmatpush.msra.mxu2 %v105_v18  ;;  %207 = vmatpush.msra.mxu3 %v429_v9  ;;  %v125_v40 = vsub.f32 %v123_v22, %v124_v34  ;;  %v131_v42 = vsub.f32 %v129_v29, %v130_v38  ;;  %v136_v48 = vand.u32 4294901760, %v135_v47 }
   0xb   :  { %20 = vperm.xlu0 %361, %v13_v26   ;;  %v102_v35 = vand.u32 4294901760, %v101_v30  ;;  %58 = vmatpush.msra.mxu0 %v429_v9  ;;  %v108_v36 = vand.u32 4294901760, %v107_v31  ;;  %v114_v39 = vand.u32 4294901760, %v113_v33  ;;  %v120_v41 = vand.u32 4294901760, %v119_v37 }
   0xc   :  { %97 = vmatpush.msra.mxu1 %v96_v32  ;;  %168 = vmatpush.msra.mxu2 %v111_v19  ;;  %v126_v43 = vand.u32 4294901760, %v125_v40  ;;  %v132_v44 = vand.u32 4294901760, %v131_v42  ;;  %v137_v49 = vsub.f32 %v135_v47, %v136_v48  ;;  %v14_v51 = vlaneseq }
   0xd   :  { %209 = vmatpush.msra.mxu3 %v442_v14  ;;  %60 = vmatpush.msra.mxu0 %v442_v14  ;;  %vm36_vm0 = vcmask 523264   ;;  %v389_v54 = vmov 0.0   ;;  %vm311_vm3 = vcmask 261120  }
   0xe   :  { %103 = vmatpush.msra.mxu1 %v102_v35  ;;  %171 = vmatpush.msra.mxu2 %v117_v21  ;;  %v138_v50 = vand.u32 4294901760, %v137_v49  ;;  %v15_v52 = vand.u32 127, %v14_v51 }
   0xf   :  { %211 = vmatpush.msra.mxu3 %v445_v15  ;;  %62 = vmatpush.msra.mxu0 %v445_v15 }
  0x10   :  { %109 = vmatpush.msra.mxu1 %v108_v36  ;;  %174 = vmatpush.msra.mxu2 %v123_v22 }
  0x11   :  { %213 = vmatpush.msra.mxu3 %v447_v16  ;;  %64 = vmatpush.msra.mxu0 %v447_v16 }
  0x12   :  { %115 = vmatpush.msra.mxu1 %v114_v39  ;;  %177 = vmatpush.msra.mxu2 %v129_v29 }
  0x13   :  { %215 = vmatpush.msra.mxu3 %v65_v46  ;;  %66 = vmatpush.msra.mxu0 %v65_v46 }
  0x14   :  { %121 = vmatpush.msra.mxu1 %v120_v41  ;;  %180 = vmatpush.msra.mxu2 %v135_v47 }
  0x15   :  { %348 = vmatpush.msrb.mxu3 %v414_v3  ;;  %240 = vmatpush.msrb.mxu0 %v94_v20 }
  0x16   :  { %127 = vmatpush.msra.mxu1 %v126_v43  ;;  %340 = vmatpush.msrb.mxu2 %v94_v20 }
  0x17   :  { %349 = vmatpush.msrb.mxu3 %v425_v7  ;;  %244 = vmatpush.msrb.mxu0 %v100_v23 }
  0x18   :  { %133 = vmatpush.msra.mxu1 %v132_v44  ;;  %341 = vmatpush.msrb.mxu2 %v100_v23 }
  0x19   :  { %350 = vmatpush.msrb.mxu3 %v427_v8  ;;  %248 = vmatpush.msrb.mxu0 %v106_v24 }
  0x1a   :  { %342 = vmatpush.msrb.mxu2 %v106_v24  ;;  %139 = vmatpush.msra.mxu1 %v138_v50 }
  0x1b   :  { %351 = vmatpush.msrb.mxu3 %v429_v9  ;;  %252 = vmatpush.msrb.mxu0 %v455_v25 }
  0x1c   :  { %287 = vmatpush.msrb.mxu1 %v414_v3  ;;  %343 = vmatpush.msrb.mxu2 %v455_v25 }
  0x1d   :  { %352 = vmatpush.msrb.mxu3 %v442_v14  ;;  %256 = vmatpush.msrb.mxu0 %v461_v28 }
  0x1e   :  { %289 = vmatpush.msrb.mxu1 %v425_v7  ;;  %344 = vmatpush.msrb.mxu2 %v461_v28 }
  0x1f   :  { %353 = vmatpush.msrb.mxu3 %v445_v15  ;;  %260 = vmatpush.msrb.mxu0 %v124_v34 }
  0x20   :  { %291 = vmatpush.msrb.mxu1 %v427_v8  ;;  %345 = vmatpush.msrb.mxu2 %v124_v34 }
  0x21   :  { %354 = vmatpush.msrb.mxu3 %v447_v16  ;;  %264 = vmatpush.msrb.mxu0 %v130_v38 }
  0x22   :  { %293 = vmatpush.msrb.mxu1 %v429_v9  ;;  %346 = vmatpush.msrb.mxu2 %v130_v38 }
  0x23   :  { %355 = vmatpush.msrb.mxu3 %v65_v46  ;;  %268 = vmatpush.msrb.mxu0 %v136_v48 }
  0x24   :  { %295 = vmatpush.msrb.mxu1 %v442_v14  ;;  %347 = vmatpush.msrb.mxu2 %v136_v48 }
  0x26   :  { %297 = vmatpush.msrb.mxu1 %v445_v15 }
  0x28   :  { %299 = vmatpush.msrb.mxu1 %v447_v16 }
  0x2a   :  { %301 = vmatpush.msrb.mxu1 %v65_v46 }
  0x74   :  { %v18_v53 = vpop.permute.xlu0 %17 }
  0x75   :  { %vm22_vm1 = vcmp.eq.s32.totalorder %v15_v52, %v18_v53 }
  0x76   :  { %v332_v55 = vsel %vm22_vm1, 1.0, %v389_v54 }
  0x77   :  { %334 = vmatmul.msk.f32.vlgmr.msra.gmra.mxu1 %vm36_vm0, %v332_v55  ;;  %v38_v56 = vsel %vm36_vm0, %v332_v55, 0 }
  0x78   :  { %v68_v57 = vsub.f32 %v38_v56, %v38_v56 }
  0x7a   :  { %183 = vmatmul.f32.vlgmr.msra.gmra.mxu2 %v68_v57  ;;  %v69_v58 = vand.u32 4294901760, %v68_v57 }
  0x7c   :  { %219 = vmatmul.f32.vlgmr.msra.gmra.mxu3 %v69_v58  ;;  %v70_v60 = vsub.f32 %v68_v57, %v69_v58 }
  0x7d   :  { %v21_v59 = vpop.permute.xlu0 %20 }
  0x7e   :  { %vm23_vm2 = vcmp.eq.s32.totalorder %v15_v52, %v21_v59  ;;  %v71_v62 = vand.u32 4294901760, %v70_v60 }
  0x7f   :  { %v333_v61 = vsel %vm23_vm2, 1.0, %v389_v54 }
  0x80   :  { %335 = vmatmul.msk.f32.gmra.mxu1 %vm36_vm0, %v333_v61  ;;  %v41_v63 = vsel %vm36_vm0, %v333_v61, 0  ;;  %72 = vmatmul.f32.vlgmr.msra.gmra.mxu0 %v71_v62 }
  0x81   :  { %v76_v0 = vsub.f32 %v41_v63, %v41_v63 }
  0x83   :  { %188 = vmatmul.f32.gmra.mxu2 %v76_v0  ;;  %v77_v1 = vand.u32 4294901760, %v76_v0 }
  0x85   :  { %225 = vmatmul.f32.gmra.mxu3 %v77_v1  ;;  %v78_v2 = vsub.f32 %v76_v0, %v77_v1 }
  0x87   :  { %v79_v3 = vand.u32 4294901760, %v78_v2 }
  0x88   :  { %338 = vmatmul.msk.f32.vlgmr.msrb.gmra.mxu1 %vm36_vm0, %v332_v55 }
  0x89   :  { %80 = vmatmul.f32.gmra.mxu0 %v79_v3 }
  0x8b   :  { %337 = vmatmul.msk.f32.vlgmr.msrb.gmra.mxu2 %vm36_vm0, %v333_v61 }
  0x8d   :  { %339 = vmatmul.msk.f32.vlgmr.msrb.gmra.mxu3 %vm36_vm0, %v333_v61 }
  0x91   :  { %336 = vmatmul.msk.f32.vlgmr.msrb.gmra.mxu0 %vm36_vm0, %v332_v55 }
  0xf4   :  { %v142_v4 = vpop.f32.mrf.mxu1 }
  0xfd   :  { %v73_v5 = vpop.f32.mrf.mxu0  ;;  %v184_v6 = vpop.f32.mrf.mxu2 }
  0xfe   :  { %v146_v8 = vpop.f32.mrf.mxu1  ;;  %v143_v9 = vadd.f32 %v142_v4, %v73_v5 }
  0xff   :  { %v220_v7 = vpop.f32.mrf.mxu3 }
 0x100   :  { %v185_v14 = vadd.f32 %v184_v6, %v143_v9 }
 0x102   :  { %v221_v16 = vadd.f32 %v220_v7, %v185_v14 }
 0x106   :  { %v81_v10 = vpop.f32.mrf.mxu0  ;;  %v189_v11 = vpop.f32.mrf.mxu2 }
 0x107   :  { %v147_v12 = vadd.f32 %v146_v8, %v81_v10  ;;  %v304_v22 = vpop.f32.mrf.mxu1 }
 0x108   :  { %v226_v13 = vpop.f32.mrf.mxu3 }
 0x109   :  { %v190_v15 = vadd.f32 %v189_v11, %v147_v12 }
 0x10b   :  { %v227_v17 = vadd.f32 %v226_v13, %v190_v15 }
 0x10e   :  { %v271_v18 = vpop.f32.mrf.mxu0  ;;  %v275_v19 = vpop.f32.mrf.mxu2 }
 0x10f   :  { %v272_v20 = vadd.f32 %v271_v18, %v221_v16  ;;  %v276_v21 = vadd.f32 %v275_v19, %v227_v17 }
 0x110   :  { %v308_v23 = vpop.f32.mrf.mxu3 }
 0x111   :  { %v305_v24 = vadd.f32 %v304_v22, %v272_v20  ;;  %v309_v25 = vadd.f32 %v308_v23, %v276_v21 }
 0x113   :  { %312 = vst.msk [vmem:[#allocation2] sm:$0xff] %vm311_vm3, %v305_v24 }
 0x114   :  { %313 = vst.msk [vmem:[#allocation2 + $0x8] sm:$0xff] %vm311_vm3, %v309_v25 }
 0x115   :  { %326 = dma.vmem_to_hbm [thread:$0]  %s319_s28, 256, %s321_s3, [#allocation3], %s391_s4, %s391_s4, %s392_s5  }
 0x116   :  { %386 = dma.done.wait [#allocation3], 256  }
 0x117   :  { %387 = vsyncadd [#allocation3], 4294967040 }
 0x118   :  { %331 = vsyncpa [#allocation3], 1 }

</bundles_post_ra>
